<compile_context>
chip_gen: v6e
topology: v6e:2x2x1
jax: 0.10.0
libtpu: 0.0.40
codegen_flags: <defaults>
</compile_context>

<pallas_src>
import jax
import jax.numpy as jnp
from jax.experimental import pallas as pl
from jax.experimental.pallas import tpu as pltpu


def _round_up(x, m):
    return ((x + m - 1) // m) * m


def _divisor_tiles(total, quantum):
    """`total` first, then every multiple of `quantum` dividing `total`, descending."""
    cands = [total]
    for m in range(total // quantum, 0, -1):
        v = m * quantum
        if total % v == 0 and v not in cands:
            cands.append(v)
    return cands


def _vmem_cap_bytes():
    """Usable scoped-VMEM cap for the current chip (safe on v5e/v6e/v7x)."""
    try:
        phys = int(pltpu.get_tpu_info().vmem_capacity_bytes)
    except Exception:
        phys = 64 << 20  # most conservative (v7x per-TensorCore VMEM)
    return min(max(phys - (8 << 20), 24 << 20), 56 << 20)


def _classifier_kernel(x_ref, w_ref, b_ref, o_ref):
    # Single K block: MXU matmul with f32 accumulation + f32 bias add.
    acc = jnp.dot(x_ref[...], w_ref[...], preferred_element_type=jnp.float32)
    o_ref[...] = (acc + b_ref[...]).astype(o_ref.dtype)


def _classifier_kernel_kblocked(x_ref, w_ref, b_ref, o_ref, acc_ref):
    # K-blocked: accumulate partial products in an f32 VMEM scratch.
    @pl.when(pl.program_id(2) == 0)
    def _():
        acc_ref[...] = jnp.zeros_like(acc_ref)

    acc_ref[...] += jnp.dot(x_ref[...], w_ref[...], preferred_element_type=jnp.float32)

    @pl.when(pl.program_id(2) == pl.num_programs(2) - 1)
    def _():
        o_ref[...] = (acc_ref[...] + b_ref[...]).astype(o_ref.dtype)


def prepare_classifier_params(weight, bias, scales, *, param_dtype=None, lane_pad=256):
    """One-time parameter prep (call at load time, NOT per forward).

    weight: (num_classes, feat_dim) nn.Linear layout; bias, scales: (num_classes,).
    Folds `scales` into weight/bias, transposes the weight to (feat_dim, N_pad) and
    zero-pads the class dim to a multiple of `lane_pad` (lane-dense stores, healthy
    N-tile sizes).  `param_dtype=jnp.bfloat16` stores the *weight* in bf16 (the
    recommended fast path on v5e/v6e/v7x); the bias is tiny and stays f32.
    """
    num_classes, feat_dim = weight.shape
    n_pad = _round_up(num_classes, lane_pad)
    s = scales.astype(jnp.float32)
    w_folded = (weight.astype(jnp.float32) * s[:, None]).T              # (feat_dim, C)
    b_folded = (bias.astype(jnp.float32) * s).reshape(1, num_classes)   # f32 always
    if param_dtype is not None:
        w_folded = w_folded.astype(param_dtype)
    if n_pad != num_classes:
        w_folded = jnp.pad(w_folded, ((0, 0), (0, n_pad - num_classes)))
        b_folded = jnp.pad(b_folded, ((0, 0), (0, n_pad - num_classes)))
    return w_folded, b_folded, num_classes


def dotproduct_classifier(x, w_folded, b_folded, num_classes, *, tb=256, out_dtype=None):
    """x: (B, feat_dim); w_folded: (feat_dim, N_pad); b_folded (f32): (1, N_pad).
    Returns (B, num_classes) = (x @ W^T + b) * scales (scales pre-folded)."""
    B, K = x.shape
    assert w_folded.shape[0] == K, "feat_dim mismatch"
    n_pad = w_folded.shape[1]
    out_dtype = x.dtype if out_dtype is None else out_dtype

    isz_x = jnp.dtype(x.dtype).itemsize
    isz_w = jnp.dtype(w_folded.dtype).itemsize
    isz_o = jnp.dtype(out_dtype).itemsize

    # ---- tile selection under the chip's VMEM budget ------------------------------
    cap = _vmem_cap_bytes()
    budget = (cap * 4) // 5                      # headroom for compiler internals

    q = 16 if x.dtype == jnp.bfloat16 else 8     # bf16 packs 2 rows per sublane
    tb_full = min(_round_up(tb, q), _round_up(B, q))
    tb_cands = []
    t = tb_full
    while True:
        tb_cands.append(t)
        if t <= q:
            break
        t = max(_round_up(t // 2, q), q)
    tn_cands = _divisor_tiles(n_pad, 128)
    tk_cands = _divisor_tiles(K, 128)

    def footprint(tb_, tn_, tk_):
        dbl = 2 * (tb_ * tk_ * isz_x + tk_ * tn_ * isz_w + tn_ * 4 + tb_ * tn_ * isz_o)
        acc = tb_ * tn_ * 4 if tk_ != K else 0
        return dbl + acc

    tb_eff = tn_eff = tk_eff = None
    # Preference: keep batch tile big, then N tile big; shrink K tile first (traffic-
    # neutral), then N, then batch.
    for tb_try in tb_cands:
        for tn_try in tn_cands:
            for tk_try in tk_cands:
                if footprint(tb_try, tn_try, tk_try) <= budget:
                    tb_eff, tn_eff, tk_eff = tb_try, tn_try, tk_try
                    break
            if tb_eff is not None:
                break
        if tb_eff is not None:
            break
    if tb_eff is None:  # absurdly large shapes: smallest legal tiles
        tb_eff, tn_eff = q, 128
        tk_eff = 128 if K % 128 == 0 else K

    nb = -(-B // tb_eff)
    nn = n_pad // tn_eff
    nk = K // tk_eff

    # Force >= 2 steps on a parallel axis when possible (v7x has 2 TensorCores).
    if nb * nn == 1:
        for c in tn_cands:
            if c < tn_eff:
                tn_eff = c
                break
        nn = n_pad // tn_eff

    # ---- grid order: larger operand becomes the resident one (HBM-read once) ------
    x_bytes = B * K * isz_x
    w_bytes = K * n_pad * isz_w
    b_bytes = n_pad * 4
    o_bytes = B * n_pad * isz_o
    batch_outer = (x_bytes + nb * w_bytes) <= (w_bytes + nn * x_bytes)

    if batch_outer:
        grid = (nb, nn, nk)
        x_map = lambda i, j, k: (i, k)
        w_map = lambda i, j, k: (k, j)
        b_map = lambda i, j, k: (0, j)
        o_map = lambda i, j, k: (i, j)
    else:
        grid = (nn, nb, nk)
        x_map = lambda j, i, k: (i, k)
        w_map = lambda j, i, k: (k, j)
        b_map = lambda j, i, k: (0, j)
        o_map = lambda j, i, k: (i, j)

    kblocked = nk > 1
    kernel = _classifier_kernel_kblocked if kblocked else _classifier_kernel
    scratch = [pltpu.VMEM((tb_eff, tn_eff), jnp.float32)] if kblocked else []

    need = footprint(tb_eff, tn_eff, tk_eff)
    vmem_limit = int(min(max(int(need * 1.25), 32 << 20), cap))

    cost = pl.CostEstimate(
        flops=2 * B * K * n_pad,
        transcendentals=0,
        bytes_accessed=x_bytes + w_bytes + b_bytes + o_bytes,
    )

    out = pl.pallas_call(
        kernel,
        out_shape=jax.ShapeDtypeStruct((B, n_pad), out_dtype),
        grid_spec=pltpu.PrefetchScalarGridSpec(
            num_scalar_prefetch=0,
            grid=grid,
            in_specs=[
                pl.BlockSpec((tb_eff, tk_eff), x_map),
                pl.BlockSpec((tk_eff, tn_eff), w_map),
                pl.BlockSpec((1, tn_eff), b_map),
            ],
            out_specs=pl.BlockSpec((tb_eff, tn_eff), o_map),
            scratch_shapes=scratch,
        ),
        compiler_params=pltpu.CompilerParams(
            dimension_semantics=("parallel", "parallel", "arbitrary"),
            vmem_limit_bytes=vmem_limit,
        ),
        cost_estimate=cost,
    )(x, w_folded, b_folded)

    return out[:, :num_classes]


if __name__ == "__main__":
    # Non-aligned small shapes: batch=12 (partial batch tile), feat_dim=256,
    # num_classes=200 (padded to 256 -> lane-dense stores, 2 class tiles).
    B, feat_dim, num_classes = 12, 256, 200

    key = jax.random.PRNGKey(0)
    kx, kw, kb, ks = jax.random.split(key, 4)

    x = jax.random.normal(kx, (B, feat_dim), dtype=jnp.float32)
    bound = 1.0 / jnp.sqrt(jnp.float32(feat_dim))
    weight = jax.random.uniform(kw, (num_classes, feat_dim), jnp.float32, -bound, bound)
    bias = jax.random.uniform(kb, (num_classes,), jnp.float32, -bound, bound)
    # Module inits scales to ones; perturb so the scale-folding path is exercised.
    scales = 1.0 + 0.1 * jax.random.normal(ks, (num_classes,), dtype=jnp.float32)

    # --- exact f32 path: validates module semantics ---------------------------------
    w32, b32, nc = prepare_classifier_params(weight, bias, scales)
    out32 = dotproduct_classifier(x, w32, b32, nc, out_dtype=jnp.float32)
    jax.block_until_ready(out32)
    ref = (x @ weight.T + bias) * scales
    assert out32.shape == (B, num_classes)
    assert jnp.allclose(out32, ref, atol=1e-4, rtol=1e-4), "f32 path mismatch"

    # --- bf16 fast path (recommended on v5e/v6e/v7x): bf16 x & W, f32 accum/bias ----
    wbf, bf32, nc = prepare_classifier_params(weight, bias, scales, param_dtype=jnp.bfloat16)
    x_bf = x.astype(jnp.bfloat16)
    out_bf = dotproduct_classifier(x_bf, wbf, bf32, nc, out_dtype=jnp.float32)
    jax.block_until_ready(out_bf)
    w_fold_bf = (weight * scales[:, None]).astype(jnp.bfloat16).astype(jnp.float32)
    ref_bf = x_bf.astype(jnp.float32) @ w_fold_bf.T + bias * scales
    assert out_bf.shape == (B, num_classes)
    assert jnp.allclose(out_bf, ref_bf, atol=2e-3, rtol=2e-3), "bf16 path mismatch"

    print("KERNEL_OK")
</pallas_src>

<mosaic_0001>
module attributes {stable_mosaic.version = 11 : i64} {
  func.func @_classifier_kernel(%arg0: i32, %arg1: i32, %arg2: i32, %arg3: memref<16x256xf32, #tpu.memory_space<vmem>>, %arg4: memref<256x128xf32, #tpu.memory_space<vmem>>, %arg5: memref<1x128xf32, #tpu.memory_space<vmem>>, %arg6: memref<16x128xf32, #tpu.memory_space<vmem>>) attributes {dimension_semantics = [#tpu.dimension_semantics<parallel>, #tpu.dimension_semantics<parallel>, #tpu.dimension_semantics<arbitrary>], iteration_bounds = array<i64: 1, 2, 1>, scalar_prefetch = 0 : i64, scratch_operands = 0 : i64, tpu.core_type = #tpu.core_type<tc>, window_params = [{transform_indices = @transform_0, window_bounds = array<i64: 16, 256>}, {transform_indices = @transform_1, window_bounds = array<i64: 256, 128>}, {transform_indices = @transform_2, window_bounds = array<i64: 1, 128>}, {transform_indices = @transform_3, window_bounds = array<i64: 16, 128>}]} {
    %c0 = arith.constant 0 : index
    %c0_0 = arith.constant 0 : index
    %0 = vector.load %arg3[%c0, %c0_0] : memref<16x256xf32, #tpu.memory_space<vmem>>, vector<16x256xf32>
    %c0_1 = arith.constant 0 : index
    %c0_2 = arith.constant 0 : index
    %1 = vector.load %arg4[%c0_1, %c0_2] : memref<256x128xf32, #tpu.memory_space<vmem>>, vector<256x128xf32>
    %cst = arith.constant dense<0.000000e+00> : vector<16x128xf32>
    %2 = tpu.matmul %0, %1, %cst {dimension_numbers = #tpu.dot_dimension_numbers<[1], [0], [0], [1], [0, 0, 1, 1], [], []>} : vector<16x256xf32>, vector<256x128xf32>, vector<16x128xf32> -> vector<16x128xf32>
    %c0_3 = arith.constant 0 : index
    %c0_4 = arith.constant 0 : index
    %3 = vector.load %arg5[%c0_3, %c0_4] : memref<1x128xf32, #tpu.memory_space<vmem>>, vector<1x128xf32>
    %4 = vector.broadcast %3 : vector<1x128xf32> to vector<16x128xf32>
    %5 = arith.addf %2, %4 : vector<16x128xf32>
    %c0_5 = arith.constant 0 : index
    %c0_6 = arith.constant 0 : index
    %6 = vector.load %arg6[%c0_5, %c0_6] : memref<16x128xf32, #tpu.memory_space<vmem>>, vector<16x128xf32>
    tpu.vector_store %arg6[%c0_5, %c0_6], %5 {strides = array<i32>} : memref<16x128xf32, #tpu.memory_space<vmem>>, vector<16x128xf32>,
    return
  }
  func.func @transform_0(%arg0: i32, %arg1: i32, %arg2: i32) -> (i32, i32) {
    %c0_i32 = arith.constant 0 : i32
    return %arg0, %arg2 : i32, i32
  }
  func.func @transform_1(%arg0: i32, %arg1: i32, %arg2: i32) -> (i32, i32) {
    %c0_i32 = arith.constant 0 : i32
    return %arg2, %arg1 : i32, i32
  }
  func.func @transform_2(%arg0: i32, %arg1: i32, %arg2: i32) -> (i32, i32) {
    %c0_i32 = arith.constant 0 : i32
    %c0_i32_0 = arith.constant 0 : i32
    return %c0_i32, %arg1 : i32, i32
  }
  func.func @transform_3(%arg0: i32, %arg1: i32, %arg2: i32) -> (i32, i32) {
    %c0_i32 = arith.constant 0 : i32
    return %arg0, %arg1 : i32, i32
  }
}

</mosaic_0001>

<bundles_post_ra>
// kernel: tpu_custom_call.1
= control target key start
LH: loop header
LB: loop body
LE: loop exit
PB: predicated region body
PF: predicated region fallthrough
CT: control target
= control target key end

     0   :  { %8 = vsyncpa [#allocation3], 0  ;;  %s1064_s0 = inlined_call_operand.hbm [shape: f32[12,256], index: 0, kind: input, shape index: {}]   ;;  %s1065_s1 = inlined_call_operand.hbm [shape: f32[256,256], index: 1, kind: input, shape index: {}]   ;;  %s1066_s2 = inlined_call_operand.vmem [shape: f32[1,256], index: 2, kind: input, shape index: {}]   ;;  %s1067_s3 = inlined_call_operand.hbm [shape: f32[12,256], index: 3, kind: output, shape index: {}]  }
   0x1   :  { %9 = vsyncpa [#allocation6], 0 }
   0x2   :  { %11 = vsyncpa [#allocation6 + $0x1], 0 }
   0x3   :  { %12 = vsyncpa [#allocation4], 0 }
   0x4   :  { %14 = vsyncpa [#allocation4 + $0x1], 0  ;;  %s846_s12 = smov 0   ;;  %s848_s13 = smov 0  }
   0x5   :  { %s850_s14 = smov 0   ;;  %s852_s15 = smov 0  }
   0x6   :  { %s854_s16 = smov 0   ;;  %s856_s17 = smov 0  }
   0x7 LB: > { %1073 = sst [smem:[#allocation11_spill]] %s814_s17  ;;  %s510_s18 = sadd.s32 4294967295, %s814_s17   ;;  %s814_s17 = sphi %s856_s17, %s20_s17   ;;  %s810_s16 = sphi %s854_s16, %s1093_s16   ;;  %s806_s15 = sphi %s852_s15, %s1092_s15   ;;  %s802_s14 = sphi %s850_s14, %s1091_s14   ;;  %s798_s13 = sphi %s848_s13, %s1090_s13   ;;  %s794_s12 = sphi %s846_s12, %s1089_s12  }
   0x8   : > { %s511_s19 = sadd.s32 4294967294, %s814_s17   ;;  %p83_p0 = scmp.ne.s32.totalorder %s802_s14, %s798_s13 }
   0x9   : > { %p84_p1 = scmp.eq.s32.totalorder %s814_s17, 0  ;;  %p89_p2 = scmp.ne.s32.totalorder %s798_s13, %s794_s12 }
   0xa   : > { %p883_p3 = scmp.eq.s32.totalorder %s510_s18, 0  ;;  %p141_p5 = scmp.eq.s32.totalorder %s510_s18, 1 }
   0xb   : > { %p887_p4 = por %p84_p1, %p83_p0  ;;  %p147_p7 = scmp.eq.s32.totalorder %s511_s19, 1 }
   0xc   : > { %p893_p6 = por %p883_p3, %p89_p2  ;;  %p897_p8 = por %p141_p5, %p83_p0 }
   0xd   : > { %p512_p9 = scmp.ge.s32.totalorder %s814_s17, 1  ;;  %p902_p10 = por %p147_p7, %p89_p2 }
   0xe   : > { %s1076_s22 = scalar_select %p893_p6, 1, 0 }
   0xf   : > { %s1077_s23 = scalar_select %p897_p8, 1, 0 }
  0x10   : > { %s1078_s24 = scalar_select %p902_p10, 1, 0 }
  0x11   : > { %p154_p11 = scmp.lt.s32.totalorder %s814_s17, 3  ;;  %s816_s26 = smov [#allocation2]  }
  0x12   : > { %1079 = sst [smem:[#allocation12_spill]] %s1078_s24  ;;  %s172_s27 = sshll.u32 %s816_s26, 4  ;;  %s173_s27 = int_to_ptr.vmem [resolvable:$true] %s172_s27 }
  0x13   : > { %p907_p12 = pnand %p512_p9, %p154_p11  ;;  %p617_p1 = scmp.lt.s32.totalorder %s814_s17, 2 }
  0x14   : > { %s35_s30 = sadd.s32 1, %s810_s16  ;;  %s687_s4 = scalar_lea.vmem %s173_s27, 512 }
  0x15   : > { %p604_p13 = pneg %p907_p12  ;;  %p923_p2 = pnand %p617_p1, %p887_p4 }
  0x16   : > { %p688_p9 = scmp.ne.s32.totalorder %s173_s27, %s687_s4  ;;  %p695_p0 = scmp.lt.s32.totalorder %s173_s27, %s173_s27 }
  0x17   : > { %p917_p5 = pnand %p604_p13, %p883_p3  ;;  %p696_p8 = scmp.lt.s32.totalorder %s687_s4, %s687_s4 }
  0x19   : > { %p678_p7 = pneg %p917_p5  ;;  %p697_p6 = por %p696_p8, %p695_p0 }
  0x1b   : > { %p690_p11 = pnand %p688_p9, %p678_p7 }
  0x1d   : > { %p691_p10 = pneg %p690_p11 }
  0x1f   : > { %p698_p13 = pnand %p697_p6, %p691_p10 }
  0x21   : > { %701 = shalt.err (!%p698_p13)
}
  0x22   : > { %s817_s5 = smov 256   ;;  %s818_s6 = smov 16  }
  0x23   : > { %607 = dma.hbm_to_vmem [thread:$0]  (!%p917_p5), %s1064_s0, 512, %s173_s27, [#allocation3], %s817_s5, %s817_s5, %s818_s6  }
  0x24   : > { %p37_p4 = scmp.ge.s32.totalorder %s35_s30, 2  ;;  %s76_s9 = sadd.s32 1, %s802_s14 }
  0x25   : > { %s186_s10 = sand.u32 1, %s802_s14   ;;  %s516_s19 = sshll.u32 %s810_s16, 7 }
  0x26   : > { %s1095_s30 = smov (%p37_p4, %s35_s30), 0  ;;  %s515_s11 = sshll.u32 %s186_s10, 8 }
  0x27   : > { %s72_s18 = ssub.s32 %s810_s16, %s1095_s30  ;;  %s198_s28 = scalar_lea.hbm %s1065_s1, %s516_s19 }
  0x28   : > { %p74_p6 = scmp.eq.s32.totalorder %s72_s18, 0  ;;  %s190_s4 = scalar_lea.vmem [#allocation5], %s515_s11 }
  0x29   : > { %s199_s17 = sshll.u32 %s190_s4, 4  ;;  %s187_s27 = scalar_lea.sflag [#allocation6], %s186_s10  ;;  %s200_s17 = int_to_ptr.vmem [resolvable:$true] %s199_s17 }
  0x2a   : > { %s948_s24 = scalar_select %p74_p6, %s802_s14, %s76_s9  }
  0x2b   : > { %p704_p8 = pneg %p923_p2  ;;  %s715_s6 = scalar_lea.vmem %s200_s17, 4096 }
  0x2c   : > { %p716_p10 = scmp.ne.s32.totalorder %s200_s17, %s715_s6  ;;  %s819_s7 = smov [#allocation5]  }
  0x2d   : > { %s720_s8 = sshll.u32 %s819_s7, 4  ;;  %s721_s8 = int_to_ptr.vmem [resolvable:$false] %s720_s8 }
  0x2e   : > { %p718_p0 = pnand %p716_p10, %p704_p8  ;;  %s722_s18 = scalar_lea.vmem %s721_s8, 8192 }
  0x2f   : > { %p723_p5 = scmp.lt.s32.totalorder %s200_s17, %s721_s8  ;;  %p724_p7 = scmp.lt.s32.totalorder %s722_s18, %s715_s6 }
  0x30   : > { %p719_p1 = pneg %p718_p0 }
  0x31   : > { %p725_p9 = por %p724_p7, %p723_p5 }
  0x33   : > { %p726_p11 = pnand %p725_p9, %p719_p1 }
  0x35   : > { %729 = shalt.err (!%p726_p11)
}
  0x36   : > { %s820_s11 = smov 128   ;;  %s821_s9 = smov 8  }
  0x37   : > { %611 = dma.hbm_to_vmem [thread:$0]  (!%p923_p2), %s198_s28, 4096, %s200_s17, %s187_s27, %s817_s5, %s820_s11, %s821_s9  }
  0x38   : > { %217 = sbr.rel (%p907_p12) target bundleno = 314 (0x13a), region = 32 }
  0x3d   : > { %781 = dma.done.wait (%p883_p3), [#allocation3], 512  }
  0x3e   : > { %783 = vsyncadd (%p883_p3), [#allocation3], 4294966784  ;;  %s962_s10 = sand.u32 1, %s798_s13   ;;  %p1083_p2 = scmp.ne.s32.totalorder %s1076_s22, 0 }
  0x3f   : > { %s519_s19 = sshll.u32 %s962_s10, 8  ;;  %s224_s21 = scalar_lea.sflag [#allocation6], %s962_s10 }
  0x40   : > { %s966_s29 = scalar_lea.vmem [#allocation5], %s519_s19 }
  0x41   : > { %785 = dma.done.wait (%p1083_p2), %s224_s21, 4096  }
  0x42   : > { %787 = vsyncadd (%p1083_p2), %s224_s21, 4294963200  ;;  %v295_v0 = vld [vmem:[%s966_s29 + $0xf8] sm:$0xff]  ;;  %v294_v2 = vld [vmem:[%s966_s29 + $0xf0] sm:$0xff]  ;;  %p256_p3 = scmp.lt.s32.totalorder %s806_s15, 1  ;;  %s520_s17 = sshll.u32 %s962_s10, 4 }
  0x43   : > { %v279_v1 = vld [vmem:[%s966_s29 + $0x78] sm:$0xff]  ;;  %526 = vmatprep.subr.mxu0 %v295_v0  ;;  %564 = vmatprep.subr.mxu1 %v295_v0  ;;  %v278_v3 = vld [vmem:[%s966_s29 + $0x70] sm:$0xff]  ;;  %v293_v4 = vld [vmem:[%s966_s29 + $0xe8] sm:$0xff]  ;;  %s252_s26 = scalar_lea.vmem [#allocation7], %s520_s17  ;;  %s523_s4 = sshll.u32 %s806_s15, 7 }
  0x44   : > { %527 = vmatpush3.msra.mxu0 %v279_v1  ;;  %580 = vmatpush3.msra.mxu1 %v279_v1  ;;  %v277_v5 = vld [vmem:[%s966_s29 + $0x68] sm:$0xff]  ;;  %v292_v6 = vld [vmem:[%s966_s29 + $0xe0] sm:$0xff]  ;;  %v291_v8 = vld [vmem:[%s966_s29 + $0xd8] sm:$0xff]  ;;  %s257_s20 = scalar_select %p256_p3, %s806_s15, 1 }
  0x45   : > { %528 = vmatprep.subr.mxu0 %v294_v2  ;;  %565 = vmatprep.subr.mxu1 %v294_v2  ;;  %v276_v7 = vld [vmem:[%s966_s29 + $0x60] sm:$0xff]  ;;  %v275_v9 = vld [vmem:[%s966_s29 + $0x58] sm:$0xff]  ;;  %v290_v10 = vld [vmem:[%s966_s29 + $0xd0] sm:$0xff]  ;;  %s396_s28 = sshll.u32 %s252_s26, 4  ;;  %s1016_s7 = scalar_lea.hbm %s1067_s3, %s523_s4  ;;  %s1011_s28 = int_to_ptr.vmem [resolvable:$true] %s396_s28 }
  0x46   : > { %529 = vmatpush3.msra.mxu0 %v278_v3  ;;  %581 = vmatpush3.msra.mxu1 %v278_v3  ;;  %v274_v11 = vld [vmem:[%s966_s29 + $0x50] sm:$0xff]  ;;  %v289_v12 = vld [vmem:[%s966_s29 + $0xc8] sm:$0xff]  ;;  %v288_v14 = vld [vmem:[%s966_s29 + $0xc0] sm:$0xff]  ;;  %s258_s5 = scalar_lea.vmem %s1066_s2, %s257_s20  ;;  %s381_s15 = scalar_lea.sflag [#allocation4], %s962_s10 }
  0x47   : > { %530 = vmatprep.subr.mxu0 %v293_v4  ;;  %566 = vmatprep.subr.mxu1 %v293_v4  ;;  %v273_v13 = vld [vmem:[%s966_s29 + $0x48] sm:$0xff]  ;;  %v272_v15 = vld [vmem:[%s966_s29 + $0x40] sm:$0xff]  ;;  %v287_v16 = vld [vmem:[%s966_s29 + $0xb8] sm:$0xff]  ;;  %s730_s8 = scalar_lea.vmem %s1011_s28, 256  ;;  %p1084_p13 = scmp.ne.s32.totalorder %s1077_s23, 0 }
  0x48   : > { %531 = vmatpush3.msra.mxu0 %v277_v5  ;;  %582 = vmatpush3.msra.mxu1 %v277_v5  ;;  %v271_v17 = vld [vmem:[%s966_s29 + $0x38] sm:$0xff]  ;;  %v286_v18 = vld [vmem:[%s966_s29 + $0xb0] sm:$0xff]  ;;  %v285_v20 = vld [vmem:[%s966_s29 + $0xa8] sm:$0xff]  ;;  %p731_p12 = scmp.ne.s32.totalorder %s1011_s28, %s730_s8  ;;  %s822_s18 = smov [#allocation7]  }
  0x49   : > { %532 = vmatprep.subr.mxu0 %v292_v6  ;;  %567 = vmatprep.subr.mxu1 %v292_v6  ;;  %v270_v19 = vld [vmem:[%s966_s29 + $0x30] sm:$0xff]  ;;  %v269_v21 = vld [vmem:[%s966_s29 + $0x28] sm:$0xff]  ;;  %v284_v22 = vld [vmem:[%s966_s29 + $0xa0] sm:$0xff]  ;;  %s734_s11 = sshll.u32 %s822_s18, 4  ;;  %s735_s11 = int_to_ptr.vmem [resolvable:$false] %s734_s11 }
  0x4a   : > { %533 = vmatpush3.msra.mxu0 %v276_v7  ;;  %583 = vmatpush3.msra.mxu1 %v276_v7  ;;  %v268_v23 = vld [vmem:[%s966_s29 + $0x20] sm:$0xff]  ;;  %v283_v24 = vld [vmem:[%s966_s29 + $0x98] sm:$0xff]  ;;  %v282_v26 = vld [vmem:[%s966_s29 + $0x90] sm:$0xff]  ;;  %p732_p4 = pnand %p731_p12, %p1084_p13  ;;  %s736_s9 = scalar_lea.vmem %s735_s11, 512 }
  0x4b   : > { %534 = vmatprep.subr.mxu0 %v291_v8  ;;  %568 = vmatprep.subr.mxu1 %v291_v8  ;;  %v267_v25 = vld [vmem:[%s966_s29 + $0x18] sm:$0xff]  ;;  %v266_v27 = vld [vmem:[%s966_s29 + $0x10] sm:$0xff]  ;;  %v281_v28 = vld [vmem:[%s966_s29 + $0x88] sm:$0xff]  ;;  %p737_p8 = scmp.lt.s32.totalorder %s1011_s28, %s735_s11  ;;  %p738_p10 = scmp.lt.s32.totalorder %s736_s9, %s730_s8 }
  0x4c   : > { %535 = vmatpush3.msra.mxu0 %v275_v9  ;;  %584 = vmatpush3.msra.mxu1 %v275_v9  ;;  %v265_v29 = vld [vmem:[%s966_s29 + $0x8] sm:$0xff]  ;;  %v280_v30 = vld [vmem:[%s966_s29 + $0x80] sm:$0xff]  ;;  %v263_v33 = vld [vmem:[#allocation2 + $0x18] sm:$0xff]  ;;  %p733_p6 = pneg %p732_p4 }
  0x4d   : > { %536 = vmatprep.subr.mxu0 %v290_v10  ;;  %569 = vmatprep.subr.mxu1 %v290_v10  ;;  %v264_v31 = vld [vmem:[%s966_s29] sm:$0xff]  ;;  %v261_v32 = vld [vmem:[#allocation2 + $0x8] sm:$0xff]  ;;  %v262_v35 = vld [vmem:[#allocation2 + $0x10] sm:$0xff]  ;;  %p739_p0 = por %p738_p10, %p737_p8 }
  0x4e   : > { %537 = vmatpush3.msra.mxu0 %v274_v11  ;;  %585 = vmatpush3.msra.mxu1 %v274_v11  ;;  %v260_v34 = vld [vmem:[#allocation2] sm:$0xff] }
  0x4f   : > { %538 = vmatprep.subr.mxu0 %v289_v12  ;;  %570 = vmatprep.subr.mxu1 %v289_v12  ;;  %v521_v38 = vld [vmem:[%s258_s5] ss:$0 sm:$0xff]  ;;  %p740_p1 = pnand %p739_p0, %p733_p6 }
  0x50   : > { %539 = vmatpush3.msra.mxu0 %v273_v13  ;;  %586 = vmatpush3.msra.mxu1 %v273_v13 }
  0x51   : > { %540 = vmatprep.subr.mxu0 %v288_v14  ;;  %571 = vmatprep.subr.mxu1 %v288_v14 }
  0x52   : > { %541 = vmatpush3.msra.mxu0 %v272_v15  ;;  %587 = vmatpush3.msra.mxu1 %v272_v15 }
  0x53   : > { %542 = vmatprep.subr.mxu0 %v287_v16  ;;  %572 = vmatprep.subr.mxu1 %v287_v16 }
  0x54   : > { %543 = vmatpush3.msra.mxu0 %v271_v17  ;;  %588 = vmatpush3.msra.mxu1 %v271_v17 }
  0x55   : > { %544 = vmatprep.subr.mxu0 %v286_v18  ;;  %573 = vmatprep.subr.mxu1 %v286_v18 }
  0x56   : > { %545 = vmatpush3.msra.mxu0 %v270_v19  ;;  %589 = vmatpush3.msra.mxu1 %v270_v19 }
  0x57   : > { %546 = vmatprep.subr.mxu0 %v285_v20  ;;  %574 = vmatprep.subr.mxu1 %v285_v20 }
  0x58   : > { %547 = vmatpush3.msra.mxu0 %v269_v21  ;;  %590 = vmatpush3.msra.mxu1 %v269_v21 }
  0x59   : > { %548 = vmatprep.subr.mxu0 %v284_v22  ;;  %575 = vmatprep.subr.mxu1 %v284_v22 }
  0x5a   : > { %549 = vmatpush3.msra.mxu0 %v268_v23  ;;  %591 = vmatpush3.msra.mxu1 %v268_v23 }
  0x5b   : > { %550 = vmatprep.subr.mxu0 %v283_v24  ;;  %576 = vmatprep.subr.mxu1 %v283_v24 }
  0x5c   : > { %551 = vmatpush3.msra.mxu0 %v267_v25  ;;  %592 = vmatpush3.msra.mxu1 %v267_v25 }
  0x5d   : > { %552 = vmatprep.subr.mxu0 %v282_v26  ;;  %577 = vmatprep.subr.mxu1 %v282_v26 }
  0x5e   : > { %553 = vmatpush3.msra.mxu0 %v266_v27  ;;  %593 = vmatpush3.msra.mxu1 %v266_v27 }
  0x5f   : > { %554 = vmatprep.subr.mxu0 %v281_v28  ;;  %578 = vmatprep.subr.mxu1 %v281_v28 }
  0x60   : > { %555 = vmatpush3.msra.mxu0 %v265_v29  ;;  %594 = vmatpush3.msra.mxu1 %v265_v29 }
  0x61   : > { %556 = vmatprep.subr.mxu0 %v280_v30  ;;  %579 = vmatprep.subr.mxu1 %v280_v30 }
  0x62   : > { %557 = vmatpush3.msra.mxu0 %v264_v31  ;;  %595 = vmatpush3.msra.mxu1 %v264_v31 }
  0x63   : > { %367 = vmatprep.mubr.f32.mxu0 %v261_v32  ;;  %372 = vmatprep.mubr.f32.mxu1 %v263_v33 }
  0x64   : > { %368 = vmatmul.mubr.f32.vlgmr.msra.gmra.mxu0 %v260_v34  ;;  %373 = vmatmul.mubr.f32.vlgmr.msra.gmra.mxu1 %v262_v35 }
 0x124   : > { %v558_v36 = vpop.f32.mrf.mxu0  ;;  %v561_v37 = vpop.f32.mrf.mxu1 }
 0x126   : > { %v559_v39 = vpop.f32.mrf.mxu0  ;;  %v562_v40 = vpop.f32.mrf.mxu1 }
 0x127   : > { %v560_v41 = vadd.f32 %v559_v39, %v558_v36  ;;  %v563_v42 = vadd.f32 %v562_v40, %v561_v37 }
 0x129   : > { %v370_v43 = vadd.f32 %v560_v41, %v521_v38  ;;  %v375_v44 = vadd.f32 %v563_v42, %v521_v38 }
 0x12b   : > { %378 = vst [vmem:[%s252_s26] sm:$0xff] %v370_v43  ;;  %379 = vst [vmem:[%s252_s26 + $0x8] sm:$0xff] %v375_v44 }
 0x12c   : > { %743 = shalt.err (!%p740_p1)
}
 0x12d   : > { %s744_s19 = scalar_lea.hbm %s1016_s7, 256  ;;  %s748_s17 = scalar_lea.hbm %s1067_s3, 512 }
 0x12e   : > { %p745_p5 = scmp.ne.s32.totalorder %s1016_s7, %s744_s19  ;;  %p749_p11 = scmp.lt.s32.totalorder %s1016_s7, %s1067_s3 }
 0x12f   : > { %p750_p2 = scmp.lt.s32.totalorder %s748_s17, %s744_s19 }
 0x130   : > { %p746_p7 = pnand %p745_p5, %p1084_p13 }
 0x131   : > { %p751_p3 = por %p750_p2, %p749_p11 }
 0x132   : > { %p747_p9 = pneg %p746_p7 }
 0x134   : > { %p752_p12 = pnand %p751_p3, %p747_p9 }
 0x136   : > { %755 = shalt.err (!%p752_p12)
}
 0x137   : > { %s823_s25 = smov 128   ;;  %s824_s5 = smov 256  }
 0x138   : > { %s825_s26 = smov 8  }
 0x139   : > { %602 = dma.vmem_to_hbm [thread:$0]  (%p1084_p13), %s1011_s28, 256, %s1016_s7, %s381_s15, %s823_s25, %s824_s5, %s825_s26  }
 0x13a PF: > { %s1085_s4 = sld [smem:[#allocation12_spill]]  ;;  %s411_s6 = sand.u32 1, %s794_s12  }
 0x13b   : > { %s1086_s27 = sld [smem:[#allocation11_spill]]  ;;  %s412_s8 = scalar_lea.sflag [#allocation4], %s411_s6 }
 0x140   : > { %p1087_p4 = scmp.ne.s32.totalorder %s1085_s4, 0 }
 0x141   : > { %p1088_p6 = scmp.ge.s32.totalorder %s1086_s27, 2 }
 0x143   : > { %p613_p8 = pnand %p1088_p6, %p1087_p4 }
 0x145   : > { %p614_p10 = pneg %p613_p8 }
 0x147   : > { %789 = dma.done.wait (%p614_p10), %s412_s8, 256  }
 0x148   : > { %791 = vsyncadd (%p614_p10), %s412_s8, 4294967040  ;;  %s20_s17 = sadd.s32 1, %s1086_s27   ;;  %s1089_s12 = smov %s798_s13 }
 0x149   : > { %p17_p0 = scmp.ge.s32.totalorder %s20_s17, 4   ;;  %s1090_s13 = smov %s802_s14 }
 0x14a   : > { %s1091_s14 = smov %s948_s24  ;;  %s1092_s15 = smov %s810_s16 }
 0x14b   : > { %s1093_s16 = smov %s1095_s30  ;;  %19 = sbr.rel (!%p17_p0) target bundleno = 7 (0x7), region = 86 }
 0x150   :  { %417 = vsyncpa [#allocation3], 1 }
 0x151   :  { %419 = vsyncpa [#allocation3 + $0x1], 1 }
 0x152   :  { %420 = vsyncpa [#allocation6], 1 }
 0x153   :  { %422 = vsyncpa [#allocation6 + $0x1], 1 }
 0x154   :  { %423 = vsyncpa [#allocation4], 1 }
 0x155   :  { %425 = vsyncpa [#allocation4 + $0x1], 1 }

</bundles_post_ra>
